<compile_context>
chip_gen: v7x
topology: tpu7x:2x2x1
jax: 0.10.0
libtpu: 0.0.40
codegen_flags: <defaults>
</compile_context>

<pallas_src>
import functools

import jax
import jax.numpy as jnp
from jax.experimental import pallas as pl
from jax.experimental.pallas import tpu as pltpu


def _make_conv_bn_relu_kernel(KH, KW, tile_rows, Wout, stride, dilation, Cin,
                              Cout):
    """Build the per-(image, row-tile) fused kernel (all params static ints)."""
    M = tile_rows * Wout
    rows_in = (tile_rows - 1) * stride + (KH - 1) * dilation + 1
    span_h = (tile_rows - 1) * stride + 1
    span_w = (Wout - 1) * stride + 1

    def kernel(x_ref, w_ref, shift_ref, o_ref):
        # x_ref:     (1, Hp, Wp, Cin)     compute dtype, one padded image
        # w_ref:     (KH*KW*Cin, Cout)    compute dtype, BN scale folded in
        # shift_ref: (1, Cout)            f32 folded BN shift (+ conv bias)
        # o_ref:     (1, M, Cout)         out dtype, one spatial row tile
        t = pl.program_id(1)
        row0 = pl.multiple_of(t * (tile_rows * stride), tile_rows * stride)

        # One dynamic load of the input rows this tile needs (outer-dim slice).
        xblk = x_ref[0, pl.ds(row0, rows_in), :, :]       # (rows_in, Wp, Cin)

        # Build the im2col tile in VMEM: taps concatenated along channels in
        # (kh, kw, cin) order to match the flattened weight layout.
        taps = []
        for kh in range(KH):
            for kw in range(KW):
                h0 = kh * dilation
                w0 = kw * dilation
                if stride == 1:
                    tap = xblk[h0:h0 + tile_rows, w0:w0 + Wout, :]
                else:
                    # TODO(synk): pre-split into stride^2 phases (space-to-depth)
                    # in the wrapper to avoid strided gathers for stride > 1.
                    tap = xblk[h0:h0 + span_h:stride, w0:w0 + span_w:stride, :]
                taps.append(tap)
        patches = jnp.concatenate(taps, axis=-1)    # (tile_rows, Wout, KH*KW*Cin)
        patches = patches.reshape(M, KH * KW * Cin)

        # Single MXU matmul with f32 accumulation, then BN shift + ReLU.
        acc = jnp.dot(patches, w_ref[...], preferred_element_type=jnp.float32)
        y = jnp.maximum(acc + shift_ref[...], 0.0)
        o_ref[...] = y.reshape(1, M, Cout).astype(o_ref.dtype)

    return kernel


def _pick_tile_rows(Hout, Wout, requested):
    """Largest divisor of Hout <= requested whose tile keeps stores sublane-aligned."""
    candidates = [th for th in range(1, Hout + 1)
                  if Hout % th == 0 and ((th * Wout) % 8 == 0 or th == Hout)]
    fits = [th for th in candidates if th <= requested]
    return max(fits) if fits else min(candidates)


def _conv_bn_relu_nhwc_impl(x_nhwc, weight, conv_bias, gamma, beta,
                            running_mean, running_var, *, stride, padding,
                            dilation, groups, eps, compute_dtype, out_dtype,
                            tile_rows):
    if groups != 1:
        # TODO(synk): grouped / depthwise conv (groups > 1, used by the DWR
        # dilated-depthwise branch) is not implemented in this kernel.
        raise NotImplementedError("groups != 1 is not supported")

    N, H, W, Cin = x_nhwc.shape
    Cout, _, KH, KW = weight.shape
    Hout = (H + 2 * padding - dilation * (KH - 1) - 1) // stride + 1
    Wout = (W + 2 * padding - dilation * (KW - 1) - 1) // stride + 1
    Hp, Wp = H + 2 * padding, W + 2 * padding

    tH = _pick_tile_rows(Hout, Wout, tile_rows)
    n_tiles = Hout // tH

    # ---- spatial zero-pad + cast (small, fused by XLA; no HBM im2col) -------
    xp = x_nhwc
    if padding > 0:
        xp = jnp.pad(xp, ((0, 0), (padding, padding), (padding, padding), (0, 0)))
    xp = xp.astype(compute_dtype)

    # ---- fold BatchNorm (eval-mode running stats) + conv bias ---------------
    scale = gamma * jax.lax.rsqrt(running_var + eps)                  # (Cout,)
    if conv_bias is None:
        conv_bias = jnp.zeros((Cout,), jnp.float32)
    shift = (conv_bias - running_mean) * scale + beta                 # (Cout,)
    shift_p = shift.reshape(1, Cout).astype(jnp.float32)

    # weight (Cout,Cin,KH,KW) -> (KH,KW,Cin,Cout), fold BN scale, flatten taps
    # into the contraction so the kernel does one (M, KH*KW*Cin) @
    # (KH*KW*Cin, Cout) matmul per tile.
    w_hwio = jnp.transpose(weight, (2, 3, 1, 0)) * scale
    w_mat = w_hwio.reshape(KH * KW * Cin, Cout).astype(compute_dtype)

    kernel = _make_conv_bn_relu_kernel(KH, KW, tH, Wout, stride, dilation,
                                       Cin, Cout)
    out = pl.pallas_call(
        kernel,
        out_shape=jax.ShapeDtypeStruct((N, Hout * Wout, Cout), out_dtype),
        grid_spec=pltpu.PrefetchScalarGridSpec(
            num_scalar_prefetch=0,
            grid=(N, n_tiles),
            in_specs=[
                # Block index ignores the row-tile axis -> DMA'd once per image.
                pl.BlockSpec((1, Hp, Wp, Cin), lambda n, t: (n, 0, 0, 0)),
                pl.BlockSpec((KH * KW * Cin, Cout), lambda n, t: (0, 0)),
                pl.BlockSpec((1, Cout), lambda n, t: (0, 0)),
            ],
            out_specs=pl.BlockSpec((1, tH * Wout, Cout),
                                   lambda n, t: (n, t, 0)),
        ),
        compiler_params=pltpu.CompilerParams(
            dimension_semantics=("parallel", "parallel"),
            vmem_limit_bytes=32 * 1024 * 1024),
    )(xp, w_mat, shift_p)

    # Free metadata reshape (row-major layouts are identical).
    return out.reshape(N, Hout, Wout, Cout)


# NHWC entry point: use this inside the C2f block to keep activations NHWC
# end-to-end and skip both layout transposes.
conv_bn_relu_nhwc = jax.jit(
    _conv_bn_relu_nhwc_impl,
    static_argnames=("stride", "padding", "dilation", "groups", "eps",
                     "compute_dtype", "out_dtype", "tile_rows"))


@functools.partial(
    jax.jit,
    static_argnames=("stride", "padding", "dilation", "groups", "eps",
                     "compute_dtype", "out_dtype", "tile_rows"))
def conv_bn_relu(x, weight, conv_bias, gamma, beta, running_mean, running_var,
                 *, stride=1, padding=0, dilation=1, groups=1, eps=1e-5,
                 compute_dtype=jnp.bfloat16, out_dtype=jnp.float32,
                 tile_rows=8):
    """Module-compatible NCHW wrapper: Conv2d + BatchNorm2d(eval) + ReLU."""
    x_nhwc = jnp.transpose(x, (0, 2, 3, 1))
    y = _conv_bn_relu_nhwc_impl(
        x_nhwc, weight, conv_bias, gamma, beta, running_mean, running_var,
        stride=stride, padding=padding, dilation=dilation, groups=groups,
        eps=eps, compute_dtype=compute_dtype, out_dtype=out_dtype,
        tile_rows=tile_rows)
    return jnp.transpose(y, (0, 3, 1, 2))


# --------------------------- references ---------------------------------------
def _reference_f32(x, weight, conv_bias, gamma, beta, running_mean, running_var,
                   *, stride, padding, dilation, eps=1e-5):
    """Full-f32 equivalent of the PyTorch module (eval mode)."""
    y = jax.lax.conv_general_dilated(
        x, weight, window_strides=(stride, stride),
        padding=[(padding, padding), (padding, padding)],
        rhs_dilation=(dilation, dilation),
        dimension_numbers=("NCHW", "OIHW", "NCHW"))
    if conv_bias is not None:
        y = y + conv_bias.reshape(1, -1, 1, 1)
    y = (y - running_mean.reshape(1, -1, 1, 1)) * jax.lax.rsqrt(
        running_var.reshape(1, -1, 1, 1) + eps)
    y = y * gamma.reshape(1, -1, 1, 1) + beta.reshape(1, -1, 1, 1)
    return jnp.maximum(y, 0.0)


def _reference_quantized(x, weight, conv_bias, gamma, beta, running_mean,
                         running_var, *, stride, padding, dilation, eps=1e-5):
    """Same arithmetic the kernel performs (bf16 operands, f32 accumulation)."""
    scale = gamma * jax.lax.rsqrt(running_var + eps)
    if conv_bias is None:
        conv_bias = jnp.zeros_like(running_mean)
    shift = (conv_bias - running_mean) * scale + beta
    w_fold = (weight * scale.reshape(-1, 1, 1, 1)).astype(jnp.bfloat16).astype(
        jnp.float32)
    x_q = x.astype(jnp.bfloat16).astype(jnp.float32)
    y = jax.lax.conv_general_dilated(
        x_q, w_fold, window_strides=(stride, stride),
        padding=[(padding, padding), (padding, padding)],
        rhs_dilation=(dilation, dilation),
        dimension_numbers=("NCHW", "OIHW", "NCHW"))
    y = y + shift.reshape(1, -1, 1, 1)
    return jnp.maximum(y, 0.0)


if __name__ == "__main__":
    key = jax.random.PRNGKey(0)
    k_x, k_w, k_b, k_g, k_be, k_m, k_v = jax.random.split(key, 7)

    # Module config: Conv(in=4, out=8, kernel_size=3, stride=1, padding=1, bias=True)
    N, Cin, H, W = 2, 4, 16, 16
    Cout, KH, KW = 8, 3, 3
    stride, padding, dilation = 1, 1, 1

    x = jax.random.normal(k_x, (N, Cin, H, W), jnp.float32)
    weight = jax.random.normal(k_w, (Cout, Cin, KH, KW), jnp.float32) * 0.1
    conv_bias = jax.random.normal(k_b, (Cout,), jnp.float32) * 0.1
    gamma = 1.0 + 0.1 * jax.random.normal(k_g, (Cout,), jnp.float32)
    beta = 0.1 * jax.random.normal(k_be, (Cout,), jnp.float32)
    running_mean = 0.1 * jax.random.normal(k_m, (Cout,), jnp.float32)
    running_var = jnp.abs(1.0 + 0.1 * jax.random.normal(k_v, (Cout,), jnp.float32))

    out = conv_bn_relu(x, weight, conv_bias, gamma, beta, running_mean,
                       running_var, stride=stride, padding=padding,
                       dilation=dilation)
    out = jax.block_until_ready(out)
    assert out.shape == (N, Cout, H, W), out.shape

    # Tight check against a reference that uses the same bf16-quantized
    # operands (isolates kernel correctness from the deliberate bf16 precision).
    ref_q = _reference_quantized(x, weight, conv_bias, gamma, beta,
                                 running_mean, running_var, stride=stride,
                                 padding=padding, dilation=dilation)
    err_q = float(jnp.max(jnp.abs(out - ref_q)))
    assert jnp.allclose(out, ref_q, atol=2e-3, rtol=2e-3), err_q

    # Loose sanity check against the full-f32 module (bf16 MXU inputs only
    # introduce ~1e-3-level absolute differences at these magnitudes).
    ref = _reference_f32(x, weight, conv_bias, gamma, beta, running_mean,
                         running_var, stride=stride, padding=padding,
                         dilation=dilation)
    err = float(jnp.max(jnp.abs(out - ref)))
    assert jnp.allclose(out, ref, atol=1e-1, rtol=1e-1), err

    # bf16-output path (recommended for the downstream C2f block: halves
    # output HBM writeback; accumulation stays f32, only the store narrows).
    out_bf16 = conv_bn_relu(x, weight, conv_bias, gamma, beta, running_mean,
                            running_var, stride=stride, padding=padding,
                            dilation=dilation, out_dtype=jnp.bfloat16)
    out_bf16 = jax.block_until_ready(out_bf16)
    assert out_bf16.dtype == jnp.bfloat16
    err_b = float(jnp.max(jnp.abs(out_bf16.astype(jnp.float32) - ref_q)))
    assert jnp.allclose(out_bf16.astype(jnp.float32), ref_q,
                        atol=5e-2, rtol=5e-2), err_b

    print("KERNEL_OK")
</pallas_src>

<mosaic_0001>
module attributes {stable_mosaic.version = 11 : i64} {
  func.func @kernel(%arg0: i32, %arg1: i32, %arg2: memref<1x18x18x4xbf16, #tpu.memory_space<vmem>>, %arg3: memref<36x8xbf16, #tpu.memory_space<vmem>>, %arg4: memref<1x8xf32, #tpu.memory_space<vmem>>, %arg5: memref<1x128x8xf32, #tpu.memory_space<vmem>>) attributes {dimension_semantics = [#tpu.dimension_semantics<parallel>, #tpu.dimension_semantics<parallel>], iteration_bounds = array<i64: 2, 2>, scalar_prefetch = 0 : i64, scratch_operands = 0 : i64, tpu.core_type = #tpu.core_type<tc>, window_params = [{transform_indices = @transform_0, window_bounds = array<i64: 1, 18, 18, 4>}, {pipeline_mode = #tpu.pipeline_mode<synchronous>, transform_indices = @transform_1, window_bounds = array<i64: 36, 8>}, {pipeline_mode = #tpu.pipeline_mode<synchronous>, transform_indices = @transform_2, window_bounds = array<i64: 1, 8>}, {transform_indices = @transform_3, window_bounds = array<i64: 1, 128, 8>}]} {
    %c8_i32 = arith.constant 8 : i32
    %0 = arith.muli %arg1, %c8_i32 : i32
    %1 = tpu.assume_multiple %0, 8 : i32
    %c0 = arith.constant 0 : index
    %2 = arith.index_cast %1 : i32 to index
    %c0_0 = arith.constant 0 : index
    %c0_1 = arith.constant 0 : index
    %3 = vector.load %arg2[%c0, %2, %c0_0, %c0_1] : memref<1x18x18x4xbf16, #tpu.memory_space<vmem>>, vector<1x10x18x4xbf16>
    %4 = vector.shape_cast %3 : vector<1x10x18x4xbf16> to vector<10x18x4xbf16>
    %5 = vector.extract_strided_slice %4 {offsets = [0, 0, 0], sizes = [8, 16, 4], strides = [1, 1, 1]} : vector<10x18x4xbf16> to vector<8x16x4xbf16>
    %6 = vector.extract_strided_slice %4 {offsets = [0, 1, 0], sizes = [8, 16, 4], strides = [1, 1, 1]} : vector<10x18x4xbf16> to vector<8x16x4xbf16>
    %7 = vector.extract_strided_slice %4 {offsets = [0, 2, 0], sizes = [8, 16, 4], strides = [1, 1, 1]} : vector<10x18x4xbf16> to vector<8x16x4xbf16>
    %8 = vector.extract_strided_slice %4 {offsets = [1, 0, 0], sizes = [8, 16, 4], strides = [1, 1, 1]} : vector<10x18x4xbf16> to vector<8x16x4xbf16>
    %9 = vector.extract_strided_slice %4 {offsets = [1, 1, 0], sizes = [8, 16, 4], strides = [1, 1, 1]} : vector<10x18x4xbf16> to vector<8x16x4xbf16>
    %10 = vector.extract_strided_slice %4 {offsets = [1, 2, 0], sizes = [8, 16, 4], strides = [1, 1, 1]} : vector<10x18x4xbf16> to vector<8x16x4xbf16>
    %11 = vector.extract_strided_slice %4 {offsets = [2, 0, 0], sizes = [8, 16, 4], strides = [1, 1, 1]} : vector<10x18x4xbf16> to vector<8x16x4xbf16>
    %12 = vector.extract_strided_slice %4 {offsets = [2, 1, 0], sizes = [8, 16, 4], strides = [1, 1, 1]} : vector<10x18x4xbf16> to vector<8x16x4xbf16>
    %13 = vector.extract_strided_slice %4 {offsets = [2, 2, 0], sizes = [8, 16, 4], strides = [1, 1, 1]} : vector<10x18x4xbf16> to vector<8x16x4xbf16>
    %14 = tpu.concatenate %5, %6, %7, %8, %9, %10, %11, %12, %13 in 2 : vector<8x16x4xbf16>, vector<8x16x4xbf16>, vector<8x16x4xbf16>, vector<8x16x4xbf16>, vector<8x16x4xbf16>, vector<8x16x4xbf16>, vector<8x16x4xbf16>, vector<8x16x4xbf16>, vector<8x16x4xbf16> -> vector<8x16x36xbf16>
    %15 = vector.shape_cast %14 : vector<8x16x36xbf16> to vector<128x36xbf16>
    %c0_2 = arith.constant 0 : index
    %c0_3 = arith.constant 0 : index
    %16 = vector.load %arg3[%c0_2, %c0_3] : memref<36x8xbf16, #tpu.memory_space<vmem>>, vector<36x8xbf16>
    %cst = arith.constant dense<0.000000e+00> : vector<128x8xf32>
    %17 = tpu.matmul %15, %16, %cst {dimension_numbers = #tpu.dot_dimension_numbers<[1], [0], [0], [1], [0, 0, 1, 1], [], []>} : vector<128x36xbf16>, vector<36x8xbf16>, vector<128x8xf32> -> vector<128x8xf32>
    %c0_4 = arith.constant 0 : index
    %c0_5 = arith.constant 0 : index
    %18 = vector.load %arg4[%c0_4, %c0_5] : memref<1x8xf32, #tpu.memory_space<vmem>>, vector<1x8xf32>
    %19 = vector.broadcast %18 : vector<1x8xf32> to vector<128x8xf32>
    %20 = arith.addf %17, %19 : vector<128x8xf32>
    %cst_6 = arith.constant 0.000000e+00 : f32
    %21 = vector.broadcast %cst_6 : f32 to vector<128x8xf32>
    %22 = arith.maximumf %20, %21 : vector<128x8xf32>
    %23 = vector.shape_cast %22 : vector<128x8xf32> to vector<1x128x8xf32>
    %c0_7 = arith.constant 0 : index
    %c0_8 = arith.constant 0 : index
    %c0_9 = arith.constant 0 : index
    %24 = vector.load %arg5[%c0_7, %c0_8, %c0_9] : memref<1x128x8xf32, #tpu.memory_space<vmem>>, vector<1x128x8xf32>
    tpu.vector_store %arg5[%c0_7, %c0_8, %c0_9], %23 {strides = array<i32>} : memref<1x128x8xf32, #tpu.memory_space<vmem>>, vector<1x128x8xf32>,
    return
  }
  func.func @transform_0(%arg0: i32, %arg1: i32) -> (i32, i32, i32, i32) {
    %c0_i32 = arith.constant 0 : i32
    %c0_i32_0 = arith.constant 0 : i32
    %c0_i32_1 = arith.constant 0 : i32
    %c0_i32_2 = arith.constant 0 : i32
    return %arg0, %c0_i32, %c0_i32_0, %c0_i32_1 : i32, i32, i32, i32
  }
  func.func @transform_1(%arg0: i32, %arg1: i32) -> (i32, i32) {
    %c0_i32 = arith.constant 0 : i32
    %c0_i32_0 = arith.constant 0 : i32
    %c0_i32_1 = arith.constant 0 : i32
    return %c0_i32, %c0_i32_0 : i32, i32
  }
  func.func @transform_2(%arg0: i32, %arg1: i32) -> (i32, i32) {
    %c0_i32 = arith.constant 0 : i32
    %c0_i32_0 = arith.constant 0 : i32
    %c0_i32_1 = arith.constant 0 : i32
    return %c0_i32, %c0_i32_0 : i32, i32
  }
  func.func @transform_3(%arg0: i32, %arg1: i32) -> (i32, i32, i32) {
    %c0_i32 = arith.constant 0 : i32
    %c0_i32_0 = arith.constant 0 : i32
    return %arg0, %arg1, %c0_i32 : i32, i32, i32
  }
}

</mosaic_0001>

<bundles_post_ra>
// kernel: conv_bn_relu.1
= control target key start
LH: loop header
LB: loop body
LE: loop exit
PB: predicated region body
PF: predicated region fallthrough
CT: control target
= control target key end

     0   :  { %s1216_s12 = smov 0   ;;  %s1218_s13 = smov 0   ;;  %s1626_s0 = inlined_call_operand.vmem [shape: bf16[2,18,18,4], index: 0, kind: input, shape index: {}]   ;;  %s1627_s1 = inlined_call_operand.vmem [shape: bf16[36,8], index: 1, kind: input, shape index: {}]   ;;  %s1628_s2 = inlined_call_operand.vmem [shape: f32[1,8], index: 2, kind: input, shape index: {}]   ;;  %s1629_s3 = inlined_call_operand.vmem [shape: f32[2,256,8], index: 3, kind: output, shape index: {}]  }
   0x1   :  { %s1220_s14 = smov 0   ;;  %s1222_s15 = smov 0  }
   0x2   :  { %s1224_s16 = smov 0  }
   0x3 LB: > { %s22_s17 = sadd.s32 1, %s1178_s14  ;;  %s25_s18 = sadd.s32 1, %s1182_s15  ;;  %s1186_s16 = sphi %s1224_s16, %s13_s16   ;;  %s1182_s15 = sphi %s1222_s15, %s1633_s15   ;;  %s1178_s14 = sphi %s1220_s14, %s1632_s14   ;;  %s1174_s13 = sphi %s1218_s13, %s1631_s13   ;;  %s1170_s12 = sphi %s1216_s12, %s1630_s12  }
   0x4   : > { %p23_p0 = scmp.ge.s32.totalorder %s22_s17, 2  ;;  %p992_p1 = scmp.ge.s32.totalorder %s1186_s16, 1 }
   0x5   : > { %p151_p2 = scmp.lt.s32.totalorder %s1186_s16, 5 }
   0x6   : > { %s1635_s17 = smov (%p23_p0, %s22_s17), 0  ;;  %s1637_s18 = smov (!%p23_p0, %s25_s18), %s1182_s15 }
   0x7   : > { %p152_p3 = pnand %p992_p1, %p151_p2  ;;  %p27_p4 = scmp.ge.s32.totalorder %s1637_s18, 2 }
   0x8   : > { %p179_p5 = scmp.lt.s32.totalorder (!%p152_p3), %s1174_s13, 1  ;;  %s1034_s19 = smul.u32 (!%p152_p3), 96, %s1170_s12  ;;  %vm406_vm0 = vcmask (!%p152_p3), 1046528   ;;  %vm293_vm1 = vsmask.f32 (!%p152_p3), 7424  ;;  %vm769_vm2 = vcmask (!%p152_p3), 1041408  }
   0x9   : > { %s1639_s18 = smov (%p27_p4, %s1637_s18), 0  ;;  %155 = sbr.rel (%p152_p3) target bundleno = 483 (0x1e3), region = 32 }
   0xa   : > { %s1188_s25 = smov (!%p152_p3), 12   ;;  %s1189_s26 = smov (!%p152_p3), 8   ;;  %vm589_vm3 = vcmask (!%p152_p3), 31744   ;;  %vm606_vm4 = vcmask (!%p152_p3), 64512   ;;  %vm640_vm5 = vcmask (!%p152_p3), 130048   ;;  %vm623_vm6 = vcmask (!%p152_p3), 97280  }
   0xb   : > { %s1190_s27 = smov (!%p152_p3), 4   ;;  %s1191_s28 = smov (!%p152_p3), 16   ;;  %vm657_vm7 = vcmask (!%p152_p3), 162816   ;;  %vm674_vm8 = vcmask (!%p152_p3), 195584   ;;  %vm691_vm9 = vcmask (!%p152_p3), 228352   ;;  %vm708_vm10 = vcmask (!%p152_p3), 261120  }
   0xc   : > { %s1192_s29 = smov (!%p152_p3), 20   ;;  %s1193_s30 = smov (!%p152_p3), 24   ;;  %vm752_vm11 = vcmask (!%p152_p3), 293888  }
   0xd   : > { %s1194_s8 = smov (!%p152_p3), 28   ;;  %s1195_s11 = smov (!%p152_p3), 32  }
  0x10   : > { %s1641_s13 = smov (!%p179_p5, %s1174_s13), 1 }
  0x11   : > { %s1076_s20 = smul.u32 216, %s1641_s13 }
  0x13   : > { %s183_s23 = scalar_lea.vmem %s1626_s0, %s1076_s20  ;;  %s995_s20 = sshll.u32 %s1641_s13, 5 }
  0x14   : > { %s1255_s24 = scalar_lea.vmem %s183_s23, %s1034_s19  ;;  %s994_s19 = sshll.u32 %s1170_s12, 4 }
  0x15   : > { %v1258_v0 = vld [vmem:[%s1255_s24 + $0x3c] sm:$0xff]   ;;  %v1261_v1 = vld [vmem:[%s1255_s24 + $0xc] sm:$0xff]   ;;  %v1128_v3 = vld [vmem:[%s1255_s24 + $0x38] ss:$0 sps:$4 sm:$0x11]   ;;  %p187_p6 = scmp.lt.s32.totalorder %s994_s19, 31 }
  0x16   : > { %460 = vrot.lane.b32.xlu1 %v1258_v0, %s1188_s25  ;;  %452 = vrot.lane.b32.xlu0 %v1261_v1, %s1188_s25  ;;  %v1268_v2 = vld [vmem:[%s1255_s24 + $0x30] sm:$0xff]   ;;  %v1272_v4 = vld [vmem:[%s1255_s24] sm:$0xff]   ;;  %v422_v5 = vrot.slane %v1258_v0, 1  ;;  %v420_v7 = vrot.slane %v1128_v3, 1  ;;  %v410_v9 = vrot.slane %v1261_v1, 1  ;;  %v307_v16 = vshrl.u32 %v1261_v1, 16 }
  0x17   : > { %v419_v6 = vrot.slane %v1268_v2, 1  ;;  %v1130_v8 = vld [vmem:[%s1255_s24 + $0x8] ss:$0 sps:$4 sm:$0x11]   ;;  %v407_v10 = vrot.slane %v1272_v4, 1  ;;  %v309_v17 = vshll.u32 %v1261_v1, 16 }
  0x18   : > { %v1131_v11 = vld [vmem:[%s1255_s24 + $0x44] ss:$0 sps:$4 sm:$0x11]   ;;  %v408_v13 = vrot.slane %v1130_v8, 1  ;;  %v295_v18 = vshrl.u32 %v1272_v4, 16  ;;  %v297_v22 = vshll.u32 %v1272_v4, 16 }
  0x19   : > { %v1281_v12 = vsel %vm406_vm0, %v419_v6, %v420_v7  ;;  %v1132_v14 = vld [vmem:[%s1255_s24 + $0x14] ss:$0 sps:$4 sm:$0x11]   ;;  %v423_v15 = vrot.slane %v1131_v11, 1  ;;  %v311_v24 = vrot.slane %v309_v17, 1  ;;  %v302_v25 = vshll.u32 %v1130_v8, 16 }
  0x1a   : > { %439 = vrot.lane.b32.xlu1 %v1281_v12, %s1189_s26  ;;  %v409_v19 = vsel %vm406_vm0, %v407_v10, %v408_v13  ;;  %v411_v20 = vrot.slane %v1132_v14, 1  ;;  %v314_v21 = vshll.u32 %v1132_v14, 16  ;;  %v355_v26 = vshrl.u32 %v1258_v0, 16  ;;  %v1305_v39 = vld [vmem:[%s1255_s24 + $0x48] sm:$0xff]   ;;  %v1312_v46 = vld [vmem:[%s1255_s24 + $0x18] sm:$0xff]   ;;  %v1330_v57 = vld [vmem:[%s1255_s24 + $0x60] sm:$0xff]  }
  0x1b   : > { %431 = vrot.lane.b32.xlu0 %v409_v19, %s1189_s26  ;;  %v1293_v23 = vsel %vm406_vm0, %v422_v5, %v423_v15  ;;  %v299_v29 = vrot.slane %v297_v22, 1  ;;  %v357_v30 = vshll.u32 %v1258_v0, 16  ;;  %v312_v31 = vor.u32 %v311_v24, %v307_v16  ;;  %v1135_v47 = vld [vmem:[%s1255_s24 + $0x50] ss:$0 sps:$4 sm:$0x11]   ;;  %s1643_s19 = smov (!%p187_p6, %s994_s19), 31 }
  0x1c   : > { %v1297_v27 = vsel %vm406_vm0, %v410_v9, %v411_v20  ;;  %v316_v28 = vrot.slane %v314_v21, 1  ;;  %v304_v32 = vrot.slane %v302_v25, 1  ;;  %v362_v33 = vshll.u32 %v1131_v11, 16  ;;  %v1136_v51 = vld [vmem:[%s1255_s24 + $0x20] ss:$0 sps:$4 sm:$0x11]   ;;  %s190_s21 = sadd.s32 %s995_s20, %s1643_s19 }
  0x1d   : > { %v343_v34 = vshrl.u32 %v1268_v2, 16  ;;  %v300_v35 = vor.u32 %v299_v29, %v295_v18  ;;  %v359_v36 = vrot.slane %v357_v30, 1  ;;  %v345_v37 = vshll.u32 %v1268_v2, 16  ;;  %v1338_v61 = vld [vmem:[%s1255_s24 + $0x6c] sm:$0xff]  }
  0x1e   : > { %441 = vrot.lane.b32.xlu1 %v1293_v23, %s1189_s26  ;;  %v350_v38 = vshll.u32 %v1128_v3, 16  ;;  %v317_v40 = vsel %vm293_vm1, %v312_v31, %v316_v28  ;;  %v364_v41 = vrot.slane %v362_v33, 1  ;;  %v369_v50 = vshll.u32 %v1305_v39, 16  ;;  %v1142_v3 = vld [vmem:[%s1255_s24 + $0x68] ss:$0 sps:$4 sm:$0x11]  }
  0x1f   : > { %433 = vrot.lane.b32.xlu0 %v1297_v27, %s1189_s26  ;;  %v305_v42 = vsel %vm293_vm1, %v300_v35, %v304_v32  ;;  %v360_v43 = vor.u32 %v359_v36, %v355_v26  ;;  %v347_v44 = vrot.slane %v345_v37, 1  ;;  %v321_v53 = vshll.u32 %v1312_v46, 16  ;;  %v1144_v15 = vld [vmem:[%s1255_s24 + $0x74] ss:$0 sps:$4 sm:$0x11]  }
  0x20   : > { %v352_v45 = vrot.slane %v350_v38, 1  ;;  %v367_v54 = vshrl.u32 %v1305_v39, 16  ;;  %v371_v55 = vrot.slane %v369_v50, 1  ;;  %v374_v56 = vshll.u32 %v1135_v47, 16  ;;  %v1383_v38 = vld [vmem:[%s1255_s24 + $0x54] sm:$0xff]  }
  0x21   : > { %v1317_v48 = vsel %vm293_vm1, %v360_v43, %v364_v41  ;;  %v348_v49 = vor.u32 %v347_v44, %v343_v34  ;;  %v326_v58 = vshll.u32 %v1136_v51, 16  ;;  %v319_v59 = vshrl.u32 %v1312_v46, 16  ;;  %v1389_v41 = vld [vmem:[%s1255_s24 + $0x24] sm:$0xff]   ;;  %v1140_v44 = vld [vmem:[%s1255_s24 + $0x2c] ss:$0 sps:$4 sm:$0x11]  }
  0x22   : > { %392 = vrot.lane.b32.xlu1 %v317_v40, %s1190_s27  ;;  %v323_v60 = vrot.slane %v321_v53, 1  ;;  %v372_v62 = vor.u32 %v371_v55, %v367_v54  ;;  %v376_v63 = vrot.slane %v374_v56, 1  ;;  %v472_v5 = vshrl.u32 %v1330_v57, 16  ;;  %v1146_v55 = vld [vmem:[%s1627_s1 + $0x8] sm:$0xff]  }
  0x23   : > { %390 = vrot.lane.b32.xlu0 %v305_v42, %s1190_s27  ;;  %v1323_v52 = vsel %vm293_vm1, %v348_v49, %v352_v45  ;;  %v474_v6 = vshll.u32 %v1330_v57, 16  ;;  %v328_v7 = vrot.slane %v326_v58, 1  ;;  %v499_v8 = vrot.slane %v1330_v57, 1  ;;  %v1139_v42 = vld [vmem:[%s1255_s24 + $0x5c] ss:$0 sps:$4 sm:$0x11]  }
  0x24   : > { %v324_v9 = vor.u32 %v323_v60, %v319_v59  ;;  %v479_v11 = vshll.u32 %v1142_v3, 16  ;;  %v543_v13 = vshrl.u32 %v1338_v61, 16  ;;  %v500_v14 = vrot.slane %v1142_v3, 1  ;;  %s996_s24 = sshll.u32 %s190_s21, 3 }
  0x25   : > { %v476_v10 = vrot.slane %v474_v6, 1  ;;  %v545_v16 = vshll.u32 %v1338_v61, 16  ;;  %v570_v17 = vrot.slane %v1338_v61, 1  ;;  %v1353_v18 = vsel %vm293_vm1, %v372_v62, %v376_v63  ;;  %v1147_v62 = vld [vmem:[%s1627_s1 + $0x10] ss:$0 sps:$4 sm:$0x33]  }
  0x26   : > { %400 = vrot.lane.b32.xlu1 %v1317_v48, %s1190_s27  ;;  %v481_v20 = vrot.slane %v479_v11, 1  ;;  %v1357_v21 = vsel %vm406_vm0, %v499_v8, %v500_v14  ;;  %v550_v24 = vshll.u32 %v1144_v15, 16  ;;  %v571_v25 = vrot.slane %v1144_v15, 1 }
  0x27   : > { %398 = vrot.lane.b32.xlu0 %v1323_v52, %s1190_s27  ;;  %v477_v19 = vor.u32 %v476_v10, %v472_v5  ;;  %v547_v22 = vrot.slane %v545_v16, 1  ;;  %v1360_v26 = vsel %vm293_vm1, %v324_v9, %v328_v7  ;;  %v425_v32 = vrot.slane %v1305_v39, 1 }
  0x28   : > { %v552_v30 = vrot.slane %v550_v24, 1  ;;  %v1368_v31 = vsel %vm406_vm0, %v570_v17, %v571_v25  ;;  %v426_v33 = vrot.slane %v1135_v47, 1  ;;  %v413_v35 = vrot.slane %v1312_v46, 1 }
  0x29   : > { %v1363_v28 = vsel %vm293_vm1, %v477_v19, %v481_v20  ;;  %v548_v29 = vor.u32 %v547_v22, %v543_v13  ;;  %v414_v36 = vrot.slane %v1136_v51, 1  ;;  %v381_v43 = vshll.u32 %v1383_v38, 16 }
  0x2a   : > { %462 = vrot.lane.b32.xlu1 %v1305_v39, %s1188_s25  ;;  %v1380_v37 = vsel %vm406_vm0, %v425_v32, %v426_v33  ;;  %v333_v45 = vshll.u32 %v1389_v41, 16  ;;  %v379_v47 = vshrl.u32 %v1383_v38, 16  ;;  %v386_v50 = vshll.u32 %v1139_v42, 16 }
  0x2b   : > { %454 = vrot.lane.b32.xlu0 %v1312_v46, %s1188_s25  ;;  %v1374_v34 = vsel %vm293_vm1, %v548_v29, %v552_v30  ;;  %v383_v49 = vrot.slane %v381_v43, 1  ;;  %v331_v51 = vshrl.u32 %v1389_v41, 16  ;;  %v338_v54 = vshll.u32 %v1140_v44, 16 }
  0x2c   : > { %v335_v53 = vrot.slane %v333_v45, 1  ;;  %v388_v58 = vrot.slane %v386_v50, 1  ;;  %v771_v3 = vsel %vm769_vm2, %v1147_v62, 0  ;;  %v428_v6 = vrot.slane %v1383_v38, 1 }
  0x2d   : > { %v384_v56 = vor.u32 %v383_v49, %v379_v47  ;;  %v340_v60 = vrot.slane %v338_v54, 1  ;;  %v429_v7 = vrot.slane %v1139_v42, 1  ;;  %v416_v8 = vrot.slane %v1389_v41, 1 }
  0x2e   : > { %491 = vrot.lane.b32.xlu1 %v1317_v48, %s1191_s28  ;;  %v336_v59 = vor.u32 %v335_v53, %v331_v51  ;;  %v417_v9 = vrot.slane %v1140_v44, 1 }
  0x2f   : > { %483 = vrot.lane.b32.xlu0 %v317_v40, %s1191_s28  ;;  %v415_v40 = vsel %vm406_vm0, %v413_v35, %v414_v36  ;;  %v389_v63 = vsel %vm293_vm1, %v384_v56, %v388_v58  ;;  %v430_v10 = vsel %vm406_vm0, %v428_v6, %v429_v7 }
  0x30   : > { %v341_v5 = vsel %vm293_vm1, %v336_v59, %v340_v60  ;;  %v418_v11 = vsel %vm406_vm0, %v416_v8, %v417_v9 }
  0x32   : > { %493 = vrot.lane.b32.xlu1 %v1353_v18, %s1191_s28 }
  0x33   : > { %485 = vrot.lane.b32.xlu0 %v1360_v26, %s1191_s28 }
  0x36   : > { %510 = vrot.lane.b32.xlu1 %v1293_v23, %s1192_s29 }
  0x37   : > { %502 = vrot.lane.b32.xlu0 %v1297_v27, %s1192_s29  ;;  %v1145_v27 = vld [vmem:[%s1627_s1] sm:$0xff]  }
  0x38   : > { %1046 = vmatprep.subr.bf16.mxu0 %v1145_v27  ;;  %1068 = vmatprep.subr.bf16.mxu1 %v1145_v27 }
  0x39   : > { %1047 = vmatpush3.bf16.msra.mxu0 %v1145_v27  ;;  %1071 = vmatpush3.bf16.msra.mxu1 %v1145_v27 }
  0x3a   : > { %512 = vrot.lane.b32.xlu1 %v1380_v37, %s1192_s29  ;;  %1048 = vmatprep.subr.bf16.mxu0 %v1146_v55 }
  0x3b   : > { %504 = vrot.lane.b32.xlu0 %v415_v40, %s1192_s29  ;;  %1069 = vmatprep.subr.bf16.mxu1 %v1146_v55 }
  0x3d   : > { %1049 = vmatpush3.bf16.msra.mxu0 %v1146_v55  ;;  %1072 = vmatpush3.bf16.msra.mxu1 %v1146_v55 }
  0x3e   : > { %531 = vrot.lane.b32.xlu1 %v1305_v39, %s1193_s30  ;;  %1074 = vmatprep.subr.msk.bf16.mxu0 %vm769_vm2, %v1147_v62 }
  0x3f   : > { %523 = vrot.lane.b32.xlu0 %v1312_v46, %s1193_s30  ;;  %1075 = vmatprep.subr.msk.bf16.mxu1 %vm769_vm2, %v1147_v62 }
  0x41   : > { %1051 = vmatpush3.bf16.msra.mxu0 %v771_v3  ;;  %1073 = vmatpush3.bf16.msra.mxu1 %v771_v3 }
  0x42   : > { %533 = vrot.lane.b32.xlu1 %v1383_v38, %s1193_s30 }
  0x43   : > { %525 = vrot.lane.b32.xlu0 %v1389_v41, %s1193_s30 }
  0x46   : > { %562 = vrot.lane.b32.xlu1 %v1353_v18, %s1194_s8 }
  0x47   : > { %554 = vrot.lane.b32.xlu0 %v1360_v26, %s1194_s8 }
  0x4a   : > { %564 = vrot.lane.b32.xlu1 %v389_v63, %s1194_s8 }
  0x4b   : > { %556 = vrot.lane.b32.xlu0 %v341_v5, %s1194_s8 }
  0x4e   : > { %581 = vrot.lane.b32.xlu1 %v1380_v37, %s1195_s11 }
  0x4f   : > { %573 = vrot.lane.b32.xlu0 %v415_v40, %s1195_s11 }
  0x52   : > { %402 = vrot.lane.b32.xlu1 %v1353_v18, %s1190_s27 }
  0x53   : > { %394 = vrot.lane.b32.xlu0 %v1360_v26, %s1190_s27 }
  0x56   : > { %583 = vrot.lane.b32.xlu1 %v430_v10, %s1195_s11 }
  0x57   : > { %575 = vrot.lane.b32.xlu0 %v418_v11, %s1195_s11 }
  0x5a   : > { %404 = vrot.lane.b32.xlu1 %v389_v63, %s1190_s27 }
  0x5b   : > { %396 = vrot.lane.b32.xlu0 %v341_v5, %s1190_s27  ;;  %s1577_s27 = scalar_lea.vmem %s1629_s3, %s996_s24 }
  0x5e   : > { %443 = vrot.lane.b32.xlu1 %v1380_v37, %s1189_s26 }
  0x5f   : > { %435 = vrot.lane.b32.xlu0 %v415_v40, %s1189_s26 }
  0x62   : > { %445 = vrot.lane.b32.xlu1 %v430_v10, %s1189_s26 }
  0x63   : > { %437 = vrot.lane.b32.xlu0 %v418_v11, %s1189_s26 }
  0x66   : > { %464 = vrot.lane.b32.xlu1 %v1383_v38, %s1188_s25 }
  0x67   : > { %456 = vrot.lane.b32.xlu0 %v1389_v41, %s1188_s25 }
  0x6a   : > { %466 = vrot.lane.b32.xlu1 %v1330_v57, %s1188_s25 }
  0x6b   : > { %458 = vrot.lane.b32.xlu0 %v1268_v2, %s1188_s25 }
  0x6e   : > { %495 = vrot.lane.b32.xlu1 %v389_v63, %s1191_s28 }
  0x6f   : > { %487 = vrot.lane.b32.xlu0 %v341_v5, %s1191_s28 }
  0x72   : > { %497 = vrot.lane.b32.xlu1 %v1363_v28, %s1191_s28 }
  0x73   : > { %489 = vrot.lane.b32.xlu0 %v1323_v52, %s1191_s28 }
  0x76   : > { %514 = vrot.lane.b32.xlu1 %v430_v10, %s1192_s29 }
  0x77   : > { %506 = vrot.lane.b32.xlu0 %v418_v11, %s1192_s29 }
  0x7a   : > { %516 = vrot.lane.b32.xlu1 %v1357_v21, %s1192_s29 }
  0x7b   : > { %508 = vrot.lane.b32.xlu0 %v1281_v12, %s1192_s29 }
  0x7e   : > { %535 = vrot.lane.b32.xlu1 %v1330_v57, %s1193_s30 }
  0x7f   : > { %527 = vrot.lane.b32.xlu0 %v1268_v2, %s1193_s30 }
  0x82   : > { %537 = vrot.lane.b32.xlu1 %v1338_v61, %s1193_s30 }
  0x83   : > { %529 = vrot.lane.b32.xlu0 %v1258_v0, %s1193_s30 }
  0x86   : > { %566 = vrot.lane.b32.xlu1 %v1363_v28, %s1194_s8 }
  0x87   : > { %558 = vrot.lane.b32.xlu0 %v1323_v52, %s1194_s8 }
  0x88   : > { %v461_v13 = vpop.permute.xlu1 %460  ;;  %v453_v14 = vpop.permute.xlu0 %452 }
  0x8a   : > { %568 = vrot.lane.b32.xlu1 %v1374_v34, %s1194_s8 }
  0x8b   : > { %560 = vrot.lane.b32.xlu0 %v1317_v48, %s1194_s8 }
  0x8c   : > { %v440_v57 = vpop.permute.xlu1 %439 }
  0x8d   : > { %v432_v15 = vpop.permute.xlu0 %431 }
  0x8e   : > { %585 = vrot.lane.b32.xlu1 %v1357_v21, %s1195_s11 }
  0x8f   : > { %577 = vrot.lane.b32.xlu0 %v1281_v12, %s1195_s11 }
  0x90   : > { %v442_v61 = vpop.permute.xlu1 %441 }
  0x91   : > { %v434_v16 = vpop.permute.xlu0 %433 }
  0x92   : > { %587 = vrot.lane.b32.xlu1 %v1368_v31, %s1195_s11 }
  0x93   : > { %579 = vrot.lane.b32.xlu0 %v1293_v23, %s1195_s11 }
  0x94   : > { %v393_v52 = vpop.permute.xlu1 %392 }
  0x95   : > { %v391_v17 = vpop.permute.xlu0 %390  ;;  %v593_v56 = vsel %vm589_vm3, %v1261_v1, %v393_v52 }
  0x96   : > { %v591_v34 = vsel %vm589_vm3, %v1272_v4, %v391_v17  ;;  %v610_v3 = vsel %vm606_vm4, %v593_v56, %v434_v16 }
  0x97   : > { %v608_v40 = vsel %vm606_vm4, %v591_v34, %v432_v15 }
  0x98   : > { %v401_v18 = vpop.permute.xlu1 %400  ;;  %v625_v44 = vsel %vm623_vm6, %v608_v40, %v453_v14 }
  0x99   : > { %v399_v48 = vpop.permute.xlu0 %398  ;;  %v601_v49 = vsel %vm589_vm3, %v1258_v0, %v401_v18 }
  0x9a   : > { %v599_v23 = vsel %vm589_vm3, %v1268_v2, %v399_v48  ;;  %v618_v60 = vsel %vm606_vm4, %v601_v49, %v442_v61 }
  0x9b   : > { %v616_v36 = vsel %vm606_vm4, %v599_v23, %v440_v57 }
  0x9c   : > { %v463_v19 = vpop.permute.xlu1 %462  ;;  %v633_v42 = vsel %vm623_vm6, %v616_v36, %v461_v13 }
  0x9d   : > { %v455_v20 = vpop.permute.xlu0 %454  ;;  %v635_v62 = vsel %vm623_vm6, %v618_v60, %v463_v19 }
  0x9e   : > { %v627_v1 = vsel %vm623_vm6, %v610_v3, %v455_v20 }
  0xa0   : > { %v492_v22 = vpop.permute.xlu1 %491 }
  0xa1   : > { %v484_v24 = vpop.permute.xlu0 %483  ;;  %v650_v2 = vsel %vm640_vm5, %v633_v42, %v492_v22 }
  0xa2   : > { %v642_v27 = vsel %vm640_vm5, %v625_v44, %v484_v24 }
  0xa4   : > { %v494_v21 = vpop.permute.xlu1 %493 }
  0xa5   : > { %v486_v25 = vpop.permute.xlu0 %485  ;;  %v652_v5 = vsel %vm640_vm5, %v635_v62, %v494_v21 }
  0xa6   : > { %v644_v8 = vsel %vm640_vm5, %v627_v1, %v486_v25 }
  0xa8   : > { %v511_v26 = vpop.permute.xlu1 %510 }
  0xa9   : > { %v503_v12 = vpop.permute.xlu0 %502  ;;  %v667_v4 = vsel %vm657_vm7, %v650_v2, %v511_v26 }
  0xaa   : > { %v659_v50 = vsel %vm657_vm7, %v642_v27, %v503_v12 }
  0xac   : > { %v513_v28 = vpop.permute.xlu1 %512 }
  0xad   : > { %v505_v29 = vpop.permute.xlu0 %504  ;;  %v669_v6 = vsel %vm657_vm7, %v652_v5, %v513_v28 }
  0xae   : > { %v661_v10 = vsel %vm657_vm7, %v644_v8, %v505_v29 }
  0xb0   : > { %v532_v30 = vpop.permute.xlu1 %531 }
  0xb1   : > { %v524_v32 = vpop.permute.xlu0 %523  ;;  %v684_v47 = vsel %vm674_vm8, %v667_v4, %v532_v30 }
  0xb2   : > { %v676_v54 = vsel %vm674_vm8, %v659_v50, %v524_v32 }
  0xb4   : > { %v534_v31 = vpop.permute.xlu1 %533 }
  0xb5   : > { %v526_v33 = vpop.permute.xlu0 %525  ;;  %v686_v9 = vsel %vm674_vm8, %v669_v6, %v534_v31 }
  0xb6   : > { %v678_v14 = vsel %vm674_vm8, %v661_v10, %v526_v33 }
  0xb8   : > { %v563_v35 = vpop.permute.xlu1 %562 }
  0xb9   : > { %v555_v37 = vpop.permute.xlu0 %554  ;;  %v701_v51 = vsel %vm691_vm9, %v684_v47, %v563_v35 }
  0xba   : > { %v693_v58 = vsel %vm691_vm9, %v676_v54, %v555_v37 }
  0xbc   : > { %v565_v43 = vpop.permute.xlu1 %564 }
  0xbd   : > { %v557_v45 = vpop.permute.xlu0 %556  ;;  %v703_v11 = vsel %vm691_vm9, %v686_v9, %v565_v43 }
  0xbe   : > { %v695_v15 = vsel %vm691_vm9, %v678_v14, %v557_v45 }
  0xc0   : > { %v582_v53 = vpop.permute.xlu1 %581 }
  0xc1   : > { %v718_v55 = vsel %vm708_vm10, %v701_v51, %v582_v53  ;;  %v574_v59 = vpop.permute.xlu0 %573 }
  0xc2   : > { %1060 = vmatprep.mubr.msk.bf16.mxu1 %vm752_vm11, %v718_v55  ;;  %v710_v0 = vsel %vm708_vm10, %v693_v58, %v574_v59 }
  0xc3   : > { %1052 = vmatprep.mubr.msk.bf16.mxu0 %vm752_vm11, %v710_v0 }
  0xc4   : > { %v403_v63 = vpop.permute.xlu1 %402 }
  0xc5   : > { %v395_v7 = vpop.permute.xlu0 %394  ;;  %v603_v40 = vsel %vm589_vm3, %v1305_v39, %v403_v63 }
  0xc6   : > { %v595_v2 = vsel %vm589_vm3, %v1312_v46, %v395_v7 }
  0xc8   : > { %v584_v13 = vpop.permute.xlu1 %583 }
  0xc9   : > { %v720_v57 = vsel %vm708_vm10, %v703_v11, %v584_v13  ;;  %v576_v61 = vpop.permute.xlu0 %575 }
  0xca   : > { %1061 = vmatmul.mubr.msk.bf16.vlgmr.msra.gmra.mrb[0].mxu1 %vm752_vm11, %v720_v57  ;;  %v712_v16 = vsel %vm708_vm10, %v695_v15, %v576_v61  ;;  %v1020_v61 = vld [vmem:[%s1628_s2] ss:$0 sm:$0xff] }
  0xcb   : > { %1053 = vmatmul.mubr.msk.bf16.vlgmr.msra.gmra.mrb[0].mxu0 %vm752_vm11, %v712_v16 }
  0xcc   : > { %v405_v52 = vpop.permute.xlu1 %404 }
  0xcd   : > { %v397_v17 = vpop.permute.xlu0 %396  ;;  %v605_v47 = vsel %vm589_vm3, %v1383_v38, %v405_v52 }
  0xce   : > { %v597_v54 = vsel %vm589_vm3, %v1389_v41, %v397_v17 }
  0xd0   : > { %v444_v18 = vpop.permute.xlu1 %443 }
  0xd1   : > { %v436_v48 = vpop.permute.xlu0 %435  ;;  %v620_v43 = vsel %vm606_vm4, %v603_v40, %v444_v18 }
  0xd2   : > { %v612_v45 = vsel %vm606_vm4, %v595_v2, %v436_v48 }
  0xd4   : > { %v446_v19 = vpop.permute.xlu1 %445 }
  0xd5   : > { %v438_v20 = vpop.permute.xlu0 %437  ;;  %v622_v51 = vsel %vm606_vm4, %v605_v47, %v446_v19 }
  0xd6   : > { %v614_v59 = vsel %vm606_vm4, %v597_v54, %v438_v20 }
  0xd8   : > { %v465_v22 = vpop.permute.xlu1 %464 }
  0xd9   : > { %v457_v24 = vpop.permute.xlu0 %456  ;;  %v637_v44 = vsel %vm623_vm6, %v620_v43, %v465_v22 }
  0xda   : > { %v629_v49 = vsel %vm623_vm6, %v612_v45, %v457_v24 }
  0xdc   : > { %v467_v21 = vpop.permute.xlu1 %466 }
  0xdd   : > { %v459_v25 = vpop.permute.xlu0 %458  ;;  %v639_v55 = vsel %vm623_vm6, %v622_v51, %v467_v21 }
  0xde   : > { %v631_v63 = vsel %vm623_vm6, %v614_v59, %v459_v25 }
  0xe0   : > { %v496_v26 = vpop.permute.xlu1 %495 }
  0xe1   : > { %v488_v12 = vpop.permute.xlu0 %487  ;;  %v654_v27 = vsel %vm640_vm5, %v637_v44, %v496_v26 }
  0xe2   : > { %v646_v53 = vsel %vm640_vm5, %v629_v49, %v488_v12 }
  0xe4   : > { %v498_v28 = vpop.permute.xlu1 %497 }
  0xe5   : > { %v490_v29 = vpop.permute.xlu0 %489  ;;  %v656_v60 = vsel %vm640_vm5, %v639_v55, %v498_v28 }
  0xe6   : > { %v648_v1 = vsel %vm640_vm5, %v631_v63, %v490_v29 }
  0xe8   : > { %v515_v30 = vpop.permute.xlu1 %514 }
  0xe9   : > { %v507_v32 = vpop.permute.xlu0 %506  ;;  %v671_v39 = vsel %vm657_vm7, %v654_v27, %v515_v30 }
  0xea   : > { %v663_v56 = vsel %vm657_vm7, %v646_v53, %v507_v32 }
  0xec   : > { %v517_v31 = vpop.permute.xlu1 %516 }
  0xed   : > { %v509_v23 = vpop.permute.xlu0 %508  ;;  %v673_v3 = vsel %vm657_vm7, %v656_v60, %v517_v31 }
  0xee   : > { %v665_v8 = vsel %vm657_vm7, %v648_v1, %v509_v23 }
  0xf0   : > { %v536_v33 = vpop.permute.xlu1 %535 }
  0xf1   : > { %v528_v34 = vpop.permute.xlu0 %527  ;;  %v688_v46 = vsel %vm674_vm8, %v671_v39, %v536_v33 }
  0xf2   : > { %v680_v0 = vsel %vm674_vm8, %v663_v56, %v528_v34 }
  0xf4   : > { %v538_v35 = vpop.permute.xlu1 %537 }
  0xf5   : > { %v530_v36 = vpop.permute.xlu0 %529  ;;  %v690_v6 = vsel %vm674_vm8, %v673_v3, %v538_v35 }
  0xf6   : > { %v682_v11 = vsel %vm674_vm8, %v665_v8, %v530_v36 }
  0xf8   : > { %v567_v37 = vpop.permute.xlu1 %566 }
  0xf9   : > { %v559_v42 = vpop.permute.xlu0 %558  ;;  %v705_v38 = vsel %vm691_vm9, %v688_v46, %v567_v37 }
  0xfa   : > { %v697_v41 = vsel %vm691_vm9, %v680_v0, %v559_v42 }
  0xfc   : > { %v569_v4 = vpop.permute.xlu1 %568 }
  0xfd   : > { %v561_v50 = vpop.permute.xlu0 %560  ;;  %v707_v9 = vsel %vm691_vm9, %v690_v6, %v569_v4 }
  0xfe   : > { %v699_v14 = vsel %vm691_vm9, %v682_v11, %v561_v50 }
 0x100   : > { %v586_v58 = vpop.permute.xlu1 %585 }
 0x101   : > { %v722_v62 = vsel %vm708_vm10, %v705_v38, %v586_v58  ;;  %v578_v5 = vpop.permute.xlu0 %577 }
 0x102   : > { %1064 = vmatprep.mubr.msk.bf16.mxu1 %vm752_vm11, %v722_v62  ;;  %v714_v7 = vsel %vm708_vm10, %v697_v41, %v578_v5 }
 0x103   : > { %1056 = vmatprep.mubr.msk.bf16.mxu0 %vm752_vm11, %v714_v7 }
 0x104   : > { %v588_v10 = vpop.permute.xlu1 %587 }
 0x105   : > { %v724_v13 = vsel %vm708_vm10, %v707_v9, %v588_v10  ;;  %v580_v57 = vpop.permute.xlu0 %579 }
 0x106   : > { %1065 = vmatmul.mubr.msk.bf16.gmra.mrb[4].mxu1 %vm752_vm11, %v724_v13  ;;  %v716_v15 = vsel %vm708_vm10, %v699_v14, %v580_v57 }
 0x107   : > { %1057 = vmatmul.mubr.msk.bf16.gmra.mrb[4].mxu0 %vm752_vm11, %v716_v15 }
 0x19d   : > { %v1062_v16 = vpop.f32.mrb[0].mxu1 }
 0x19e   : > { %v848_v52 = vadd.f32 %v1062_v16, %v1020_v61  ;;  %v839_v17 = vpop.f32.mrb[1].mxu1  ;;  %v1054_v18 = vpop.f32.mrb[0].mxu0 }
 0x19f   : > { %v840_v48 = vadd.f32 %v1020_v61, %v839_v17  ;;  %v1063_v19 = vpop.f32.mrb[2].mxu1  ;;  %v816_v20 = vadd.f32 %v1054_v18, %v1020_v61  ;;  %v807_v24 = vpop.f32.mrb[1].mxu0 }
 0x1a0   : > { %v880_v22 = vmax.f32 %v848_v52, 0.0  ;;  %v851_v21 = vadd.f32 %v1063_v19, %v1020_v61  ;;  %v842_v25 = vpop.f32.mrb[3].mxu1  ;;  %v808_v26 = vadd.f32 %v1020_v61, %v807_v24  ;;  %v1055_v28 = vpop.f32.mrb[2].mxu0 }
 0x1a1   : > { %v878_v12 = vmax.f32 %v840_v48, 0.0  ;;  %v843_v29 = vadd.f32 %v1020_v61, %v842_v25  ;;  %v872_v30 = vmax.f32 %v816_v20, 0.0  ;;  %v819_v32 = vadd.f32 %v1055_v28, %v1020_v61  ;;  %v810_v23 = vpop.f32.mrb[3].mxu0 }
 0x1a2   : > { %896 = vst.msk [vmem:[%s1577_s27 + $0x50] sm:$0xff] %vm606_vm4, %v880_v22  ;;  %v881_v31 = vmax.f32 %v851_v21, 0.0  ;;  %v870_v33 = vmax.f32 %v808_v26, 0.0  ;;  %v811_v34 = vadd.f32 %v1020_v61, %v810_v23 }
 0x1a3   : > { %894 = vst.msk [vmem:[%s1577_s27 + $0x40] sm:$0xff] %vm606_vm4, %v878_v12  ;;  %v879_v35 = vmax.f32 %v843_v29, 0.0  ;;  %888 = vst.msk [vmem:[%s1577_s27 + $0x10] sm:$0xff] %vm606_vm4, %v872_v30  ;;  %v873_v36 = vmax.f32 %v819_v32, 0.0 }
 0x1a4   : > { %897 = vst.msk [vmem:[%s1577_s27 + $0x58] sm:$0xff] %vm606_vm4, %v881_v31  ;;  %886 = vst.msk [vmem:[%s1577_s27] sm:$0xff] %vm606_vm4, %v870_v33  ;;  %v871_v37 = vmax.f32 %v811_v34, 0.0 }
 0x1a5   : > { %895 = vst.msk [vmem:[%s1577_s27 + $0x48] sm:$0xff] %vm606_vm4, %v879_v35  ;;  %889 = vst.msk [vmem:[%s1577_s27 + $0x18] sm:$0xff] %vm606_vm4, %v873_v36 }
 0x1a6   : > { %887 = vst.msk [vmem:[%s1577_s27 + $0x8] sm:$0xff] %vm606_vm4, %v871_v37 }
 0x1d9   : > { %v1066_v40 = vpop.f32.mrb[4].mxu1 }
 0x1da   : > { %v864_v42 = vadd.f32 %v1066_v40, %v1020_v61  ;;  %v855_v43 = vpop.f32.mrb[5].mxu1  ;;  %v1058_v2 = vpop.f32.mrb[4].mxu0 }
 0x1db   : > { %v856_v44 = vadd.f32 %v1020_v61, %v855_v43  ;;  %v1067_v4 = vpop.f32.mrb[6].mxu1  ;;  %v832_v45 = vadd.f32 %v1058_v2, %v1020_v61  ;;  %v823_v47 = vpop.f32.mrb[5].mxu0 }
 0x1dc   : > { %v884_v27 = vmax.f32 %v864_v42, 0.0  ;;  %v867_v49 = vadd.f32 %v1067_v4, %v1020_v61  ;;  %v858_v39 = vpop.f32.mrb[7].mxu1  ;;  %v824_v50 = vadd.f32 %v1020_v61, %v823_v47  ;;  %v1059_v53 = vpop.f32.mrb[6].mxu0 }
 0x1dd   : > { %v882_v51 = vmax.f32 %v856_v44, 0.0  ;;  %v859_v46 = vadd.f32 %v1020_v61, %v858_v39  ;;  %v876_v54 = vmax.f32 %v832_v45, 0.0  ;;  %v835_v55 = vadd.f32 %v1059_v53, %v1020_v61  ;;  %v826_v38 = vpop.f32.mrb[7].mxu0 }
 0x1de   : > { %900 = vst.msk [vmem:[%s1577_s27 + $0x70] sm:$0xff] %vm606_vm4, %v884_v27  ;;  %v885_v56 = vmax.f32 %v867_v49, 0.0  ;;  %v874_v58 = vmax.f32 %v824_v50, 0.0  ;;  %v827_v59 = vadd.f32 %v1020_v61, %v826_v38 }
 0x1df   : > { %898 = vst.msk [vmem:[%s1577_s27 + $0x60] sm:$0xff] %vm606_vm4, %v882_v51  ;;  %v883_v60 = vmax.f32 %v859_v46, 0.0  ;;  %892 = vst.msk [vmem:[%s1577_s27 + $0x30] sm:$0xff] %vm606_vm4, %v876_v54  ;;  %v877_v0 = vmax.f32 %v835_v55, 0.0 }
 0x1e0   : > { %901 = vst.msk [vmem:[%s1577_s27 + $0x78] sm:$0xff] %vm606_vm4, %v885_v56  ;;  %890 = vst.msk [vmem:[%s1577_s27 + $0x20] sm:$0xff] %vm606_vm4, %v874_v58  ;;  %v875_v62 = vmax.f32 %v827_v59, 0.0 }
 0x1e1   : > { %899 = vst.msk [vmem:[%s1577_s27 + $0x68] sm:$0xff] %vm606_vm4, %v883_v60  ;;  %893 = vst.msk [vmem:[%s1577_s27 + $0x38] sm:$0xff] %vm606_vm4, %v877_v0 }
 0x1e2   : > { %891 = vst.msk [vmem:[%s1577_s27 + $0x28] sm:$0xff] %vm606_vm4, %v875_v62 }
 0x1e3 PF: > { %s13_s16 = sadd.s32 1, %s1186_s16   ;;  %s1630_s12 = smov %s1178_s14 }
 0x1e4   : > { %p10_p7 = scmp.ge.s32.totalorder %s13_s16, 6   ;;  %s1631_s13 = smov %s1182_s15 }
 0x1e5   : > { %s1632_s14 = smov %s1635_s17  ;;  %s1633_s15 = smov %s1639_s18 }
 0x1e6   :  { %12 = sbr.rel (!%p10_p7) target bundleno = 3 (0x3), region = 63 }

</bundles_post_ra>
